<compile_context>
chip_gen: v7x
topology: tpu7x:2x2x1
jax: 0.10.0
libtpu: 0.0.40
codegen_flags: <defaults>
</compile_context>

<pallas_src>
import math
import functools

import numpy as np
import jax
import jax.numpy as jnp
from jax.experimental import pallas as pl
from jax.experimental.pallas import tpu as pltpu


_VMEM_LIMIT = 48 * 1024 * 1024   # <= ~48 MiB: safe headroom on v7x, generous on v5e/v6e


def _round_up(x, m):
    return (x + m - 1) // m * m


def _cp(sem):
    return pltpu.CompilerParams(dimension_semantics=sem, vmem_limit_bytes=_VMEM_LIMIT)


def _largest_divisor(n, cap, quantum=1):
    """Largest divisor of n that is <= cap and a multiple of quantum (0 if none)."""
    best = 0
    d = 1
    while d * d <= n:
        if n % d == 0:
            for c in (d, n // d):
                if c <= cap and c % quantum == 0 and c > best:
                    best = c
        d += 1
    return best


def _pick_row_tile(H, cap):
    if H <= cap:
        return H
    best, best8 = 1, 0
    for d in range(1, cap + 1):
        if H % d == 0:
            best = d
            if d % 8 == 0:
                best8 = d
    return best8 if best8 else best


def _pick_lane_tile(n, cap):
    if n <= cap:
        return n
    d = _largest_divisor(n, cap, 128)
    return d if d else n


def _make_row_tiles(xp, H, th, halo):
    """xp: (B, H+halo, Wf, C) -> (B*n, th+halo, Wf, C) haloed row tiles (n = H // th)."""
    n = H // th
    if n == 1:
        return xp, 1
    tiles = jnp.stack([xp[:, i * th: i * th + th + halo] for i in range(n)], axis=1)
    B = xp.shape[0]
    return tiles.reshape(B * n, th + halo, xp.shape[2], xp.shape[3]), n


# ----------------------------------------------------------------------------
# Fused GEMM:  y = act(LN(x) @ W + b) * gamma + residual       (bf16 in, f32 math, any-dtype out)
# ----------------------------------------------------------------------------
def _fused_gemm_kernel(*refs, have_ln, have_bias, have_scale, have_res, activation):
    refs = list(refs)
    x_ref = refs.pop(0)
    w_ref = refs.pop(0)
    g_ref = refs.pop(0) if have_ln else None
    gb_ref = refs.pop(0) if have_ln else None
    b_ref = refs.pop(0) if have_bias else None
    s_ref = refs.pop(0) if have_scale else None
    r_ref = refs.pop(0) if have_res else None
    o_ref = refs.pop(0)

    x = x_ref[...]                                    # bf16
    if have_ln:                                       # LayerNorm prologue kept in f32 (eps=1e-5)
        xf = x.astype(jnp.float32)
        mu = jnp.mean(xf, axis=-1, keepdims=True)
        xc = xf - mu
        var = jnp.mean(xc * xc, axis=-1, keepdims=True)
        x = (xc * jax.lax.rsqrt(var + 1e-5) * g_ref[...] + gb_ref[...]).astype(jnp.bfloat16)
    y = jnp.dot(x, w_ref[...], preferred_element_type=jnp.float32)
    if have_bias:
        y = y + b_ref[...]
    if activation == "gelu":
        # TODO(synk): PyTorch nn.GELU() is erf-exact; tanh approximation used in-kernel.
        y = jax.nn.gelu(y, approximate=True)
    elif activation == "leaky_relu":
        y = jnp.where(y >= 0, y, 0.01 * y)
    if have_scale:
        y = y * s_ref[...]
    if have_res:
        y = y + r_ref[...].astype(jnp.float32)
    o_ref[...] = y.astype(o_ref.dtype)


def fused_linear(x, w, *, bias=None, ln=None, activation=None, scale=None, residual=None,
                 out_dtype=jnp.float32):
    """x: (..., K), w: (K, N) bf16.  bf16 MXU operands, f32 accumulation, out_dtype output."""
    lead = x.shape[:-1]
    K = x.shape[-1]
    N = w.shape[-1]
    x2 = x.reshape(-1, K).astype(jnp.bfloat16)
    M = x2.shape[0]

    # M tiling without pad/slice whenever possible.
    if M % 8 == 0:
        tm, Mp = _largest_divisor(M, 256, 8), M
    elif M <= 256:
        tm, Mp = M, M
    else:
        tm = 256
        Mp = _round_up(M, tm)
    if Mp != M:
        x2 = jnp.pad(x2, ((0, Mp - M), (0, 0)))

    # N tiling only for very wide weights; N is the slow grid axis so the weight block is resident.
    if N <= 1024:
        tn, Np = N, N
    else:
        tn = _largest_divisor(N, 1024, 128)
        if tn:
            Np = N
        else:
            tn = 512
            Np = _round_up(N, tn)

    wb = w.astype(jnp.bfloat16)
    if Np != N:
        wb = jnp.pad(wb, ((0, 0), (0, Np - N)))

    inputs = [x2, wb]
    in_specs = [pl.BlockSpec((tm, K), lambda j, i: (i, 0)),
                pl.BlockSpec((K, tn), lambda j, i: (0, j))]
    if ln is not None:
        g, b2 = ln
        inputs += [g.reshape(1, K).astype(jnp.float32),
                   b2.reshape(1, K).astype(jnp.float32)]
        in_specs += [pl.BlockSpec((1, K), lambda j, i: (0, 0)),
                     pl.BlockSpec((1, K), lambda j, i: (0, 0))]
    if bias is not None:
        bvec = bias.reshape(1, N).astype(jnp.float32)
        if Np != N:
            bvec = jnp.pad(bvec, ((0, 0), (0, Np - N)))
        inputs.append(bvec)
        in_specs.append(pl.BlockSpec((1, tn), lambda j, i: (0, j)))
    if scale is not None:
        svec = scale.reshape(1, N).astype(jnp.float32)
        if Np != N:
            svec = jnp.pad(svec, ((0, 0), (0, Np - N)))
        inputs.append(svec)
        in_specs.append(pl.BlockSpec((1, tn), lambda j, i: (0, j)))
    if residual is not None:
        r2 = residual.reshape(-1, N).astype(jnp.bfloat16)     # residual streamed bf16
        if Mp != M or Np != N:
            r2 = jnp.pad(r2, ((0, Mp - M), (0, Np - N)))
        inputs.append(r2)
        in_specs.append(pl.BlockSpec((tm, tn), lambda j, i: (i, j)))

    out = pl.pallas_call(
        functools.partial(_fused_gemm_kernel,
                          have_ln=ln is not None, have_bias=bias is not None,
                          have_scale=scale is not None, have_res=residual is not None,
                          activation=activation),
        out_shape=jax.ShapeDtypeStruct((Mp, Np), out_dtype),
        grid=(Np // tn, Mp // tm),
        in_specs=in_specs,
        out_specs=pl.BlockSpec((tm, tn), lambda j, i: (i, j)),
        compiler_params=_cp(("parallel", "parallel")),
    )(*inputs)
    if Mp != M or Np != N:
        out = out[:M, :N]
    return out.reshape(*lead, N)


# ----------------------------------------------------------------------------
# Multi-head cross attention (grid over batch x query tiles; heads sliced on the lane axis)
# ----------------------------------------------------------------------------
def _mha_kernel(q_ref, kv_ref, o_ref, *, num_heads, scale):
    # TODO(synk): flash-style KV-tiled online-softmax variant for very long sequences.
    q = q_ref[0]                      # (tq, C) bf16
    kv = kv_ref[0]                    # (M, 2C) bf16
    C = q.shape[-1]
    D = C // num_heads
    for h in range(num_heads):
        qh = q[:, h * D:(h + 1) * D]
        kh = kv[:, h * D:(h + 1) * D]
        vh = kv[:, C + h * D:C + (h + 1) * D]
        s = jax.lax.dot_general(qh, kh, (((1,), (1,)), ((), ())),
                                preferred_element_type=jnp.float32) * scale
        s = s - jnp.max(s, axis=-1, keepdims=True)
        p = jnp.exp(s)
        p = p * pl.reciprocal(jnp.sum(p, axis=-1, keepdims=True), approx=True)
        res = jnp.dot(p.astype(jnp.bfloat16), vh, preferred_element_type=jnp.float32)
        o_ref[0, :, h * D:(h + 1) * D] = res.astype(o_ref.dtype)   # bound live ranges per head


def pallas_mha(q, kv, num_heads, out_dtype=jnp.bfloat16):
    B, N, C = q.shape
    M = kv.shape[1]
    scale = 1.0 / math.sqrt(C // num_heads)
    tq = _largest_divisor(N, 256, 8) if N % 8 == 0 else N
    return pl.pallas_call(
        functools.partial(_mha_kernel, num_heads=num_heads, scale=scale),
        out_shape=jax.ShapeDtypeStruct((B, N, C), out_dtype),
        grid=(B, N // tq),
        in_specs=[pl.BlockSpec((1, tq, C), lambda b, i: (b, i, 0)),
                  pl.BlockSpec((1, M, 2 * C), lambda b, i: (b, 0, 0))],
        out_specs=pl.BlockSpec((1, tq, C), lambda b, i: (b, i, 0)),
        compiler_params=_cp(("parallel", "parallel")),
    )(q.astype(jnp.bfloat16), kv.astype(jnp.bfloat16))


# ----------------------------------------------------------------------------
# Depthwise 7x7 conv (ConvNeXt block), halo row-tiled, bf16 input stream / f32 accumulation
# ----------------------------------------------------------------------------
def _dwconv7_kernel(x_ref, w_ref, b_ref, o_ref, *, th, W):
    x = x_ref[0].astype(jnp.float32)                    # (th+6, W+6, C)
    acc = jnp.zeros(o_ref.shape[1:], jnp.float32) + b_ref[...]
    for kx in range(7):                                 # 7 sublane (W-axis) shifts only
        xs = x[:, kx:kx + W, :]
        for ky in range(7):                             # H-axis slices are cheap offsets
            acc = acc + xs[ky:ky + th] * w_ref[ky * 7 + kx]
    o_ref[0] = acc.astype(o_ref.dtype)


def pallas_dwconv7x7(x, w49, bias, out_dtype=jnp.float32):
    """Depthwise 7x7 conv, zero padding 3.  x: (B,H,W,C), w49: (49,C)."""
    B, H, W, C = x.shape
    xp = jnp.pad(x.astype(jnp.bfloat16), ((0, 0), (3, 3), (3, 3), (0, 0)))
    th = _pick_row_tile(H, 64)
    xs, n = _make_row_tiles(xp, H, th, 6)
    out = pl.pallas_call(
        functools.partial(_dwconv7_kernel, th=th, W=W),
        out_shape=jax.ShapeDtypeStruct((B * n, th, W, C), out_dtype),
        grid=(B * n,),
        in_specs=[pl.BlockSpec((1, th + 6, W + 6, C), lambda g: (g, 0, 0, 0)),
                  pl.BlockSpec((49, 1, C), lambda g: (0, 0, 0)),
                  pl.BlockSpec((1, C), lambda g: (0, 0))],
        out_specs=pl.BlockSpec((1, th, W, C), lambda g: (g, 0, 0, 0)),
        compiler_params=_cp(("parallel",)),
    )(xs, w49.astype(jnp.float32).reshape(49, 1, C), bias.reshape(1, C).astype(jnp.float32))
    return out.reshape(B, H, W, C)


# ----------------------------------------------------------------------------
# Fused 3x3 conv, reflect padding 1: tap-merged MXU GEMMs (K=3*Cin), halo row-tiled,
# optional fused leaky-ReLU and fused trailing 1x1 (Cmid -> 1) projection.
# ----------------------------------------------------------------------------
def _conv3x3_kernel(*refs, th, W, Cin, activation, have_post):
    refs = list(refs)
    x_ref, w_ref, b_ref = refs[0], refs[1], refs[2]
    if have_post:
        pw_ref, pb_ref, o_ref = refs[3], refs[4], refs[5]
    else:
        o_ref = refs[3]
    x = x_ref[0]                                       # (th+2, Wp+2, Cin) bf16
    Cout = w_ref.shape[-1]
    acc = jnp.zeros((th * W, Cout), jnp.float32)
    for ky in range(3):
        rows = x[ky:ky + th]                           # (th, Wp+2, Cin)
        patch = jnp.concatenate([rows[:, kx:kx + W, :] for kx in range(3)], axis=-1)
        patch = patch.reshape(th * W, 3 * Cin)         # K = 3*Cin per GEMM
        acc = acc + jnp.dot(patch, w_ref[ky], preferred_element_type=jnp.float32)
    y = acc + b_ref[...]
    if activation == "leaky_relu":
        y = jnp.where(y >= 0, y, 0.01 * y)
    if have_post:                                      # fused 1x1 projection (VPU reduction)
        y = jnp.sum(y * pw_ref[...], axis=-1, keepdims=True) + pb_ref[...]
    o_ref[0] = y.astype(o_ref.dtype)


def conv3x3_reflect(x, w3, b, activation=None, post=None):
    """3x3 conv, reflect pad 1.  w3: (9, Cin, Cout) bf16, tap order (ky, kx).
    post=(w1x1, b1x1) fuses a trailing 1x1 Cout->1 projection into the epilogue."""
    B, H, W, Cin = x.shape
    Cout = w3.shape[-1]
    xp = jnp.pad(x.astype(jnp.bfloat16), ((0, 0), (1, 1), (1, 1), (0, 0)), mode="reflect")
    Wp = _round_up(W, 8)
    if Wp != W:                                        # pad once instead of HBM im2col fallback
        xp = jnp.pad(xp, ((0, 0), (0, 0), (0, Wp - W), (0, 0)))
    th = _pick_row_tile(H, 64)
    xs, n = _make_row_tiles(xp, H, th, 2)
    w3r = w3.astype(jnp.bfloat16).reshape(3, 3, Cin, Cout).reshape(3, 3 * Cin, Cout)
    Cfin = 1 if post is not None else Cout

    inputs = [xs, w3r, b.reshape(1, Cout).astype(jnp.float32)]
    in_specs = [pl.BlockSpec((1, th + 2, Wp + 2, Cin), lambda g: (g, 0, 0, 0)),
                pl.BlockSpec((3, 3 * Cin, Cout), lambda g: (0, 0, 0)),
                pl.BlockSpec((1, Cout), lambda g: (0, 0))]
    if post is not None:
        pw, pb = post
        inputs += [pw.astype(jnp.float32).reshape(1, Cout),
                   jnp.asarray(pb, jnp.float32).reshape(1, 1)]
        in_specs += [pl.BlockSpec((1, Cout), lambda g: (0, 0)),
                     pl.BlockSpec((1, 1), lambda g: (0, 0))]

    out = pl.pallas_call(
        functools.partial(_conv3x3_kernel, th=th, W=Wp, Cin=Cin,
                          activation=activation, have_post=post is not None),
        out_shape=jax.ShapeDtypeStruct((B * n, th * Wp, Cfin), jnp.float32),
        grid=(B * n,),
        in_specs=in_specs,
        out_specs=pl.BlockSpec((1, th * Wp, Cfin), lambda g: (g, 0, 0)),
        compiler_params=_cp(("parallel",)),
    )(*inputs)
    out = out.reshape(B, H, Wp, Cfin)
    if Wp != W:
        out = out[:, :, :W]
    return out


# ----------------------------------------------------------------------------
# Bilinear resize (channels stay on the lane axis; H-resize lane-tiled left GEMM)
# ----------------------------------------------------------------------------
def _resize_matrix_T(n_in, n_out, align_corners, antialias=False):
    """(n_out, n_in) bilinear interpolation matrix (applied as M @ x).
    NOTE: antialias path clips out-of-range taps to the border after normalization,
    which can differ slightly from PyTorch at the image edges."""
    M = np.zeros((n_in, n_out), dtype=np.float64)
    if align_corners:
        if n_out == 1:
            src = np.zeros((1,))
        else:
            src = np.arange(n_out) * (n_in - 1) / (n_out - 1)
        i0 = np.clip(np.floor(src).astype(int), 0, n_in - 1)
        i1 = np.minimum(i0 + 1, n_in - 1)
        w1 = src - i0
        for j in range(n_out):
            M[i0[j], j] += 1.0 - w1[j]
            M[i1[j], j] += w1[j]
    else:
        scale = n_in / n_out
        support = max(scale, 1.0) if antialias else 1.0
        centers = (np.arange(n_out) + 0.5) * scale - 0.5
        for j in range(n_out):
            c = centers[j]
            lo = int(np.floor(c - support))
            hi = int(np.ceil(c + support))
            idx = np.arange(lo, hi + 1)
            wts = np.maximum(0.0, 1.0 - np.abs(idx - c) / support)
            s = wts.sum()
            idx = np.clip(idx, 0, n_in - 1)
            for i, wv in zip(idx, wts):
                M[i, j] += wv / s
    return jnp.asarray(M.T, jnp.float32)


def _resize_h_kernel(x_ref, m_ref, o_ref):
    o_ref[0] = jnp.dot(m_ref[...], x_ref[0].astype(jnp.float32),
                       preferred_element_type=jnp.float32).astype(o_ref.dtype)


def _resize_w_kernel(x_ref, m_ref, o_ref, *, th):
    # TODO(synk): batch the th per-row GEMMs into one (out_w,W)@(W,th*C) GEMM via an in-VMEM
    # (th,W,C)->(W,th*C) permute once relayout lowering for tiny C is validated.
    for r in range(th):
        o_ref[0, r] = jnp.dot(m_ref[...], x_ref[0, r].astype(jnp.float32),
                              preferred_element_type=jnp.float32).astype(o_ref.dtype)


def resize_bilinear(x, out_h, out_w, align_corners, antialias=False, out_dtype=jnp.float32):
    """x: (B,H,W,C) NHWC -> (B,out_h,out_w,C)."""
    B, H, W, C = x.shape
    if out_h == H and out_w == W:
        return x.astype(out_dtype)
    y = x
    if out_h != H:
        mh = _resize_matrix_T(H, out_h, align_corners, antialias)       # (out_h, H)
        WC = W * C
        tc = _pick_lane_tile(WC, 4096)                                  # lane-axis tiling
        h_dtype = out_dtype if out_w == W else jnp.float32
        yf = y.reshape(B, H, WC)                                        # free reshape
        y = pl.pallas_call(
            _resize_h_kernel,
            out_shape=jax.ShapeDtypeStruct((B, out_h, WC), h_dtype),
            grid=(B, WC // tc),
            in_specs=[pl.BlockSpec((1, H, tc), lambda b, j: (b, 0, j)),
                      pl.BlockSpec((out_h, H), lambda b, j: (0, 0))],
            out_specs=pl.BlockSpec((1, out_h, tc), lambda b, j: (b, 0, j)),
            compiler_params=_cp(("parallel", "parallel")),
        )(yf, mh).reshape(B, out_h, W, C)
    if out_w != W:
        Hc = y.shape[1]
        th = _largest_divisor(Hc, 8, 1)
        mw = _resize_matrix_T(W, out_w, align_corners, antialias)       # (out_w, W)
        y = pl.pallas_call(
            functools.partial(_resize_w_kernel, th=th),
            out_shape=jax.ShapeDtypeStruct((B, Hc, out_w, C), out_dtype),
            grid=(B, Hc // th),
            in_specs=[pl.BlockSpec((1, th, W, C), lambda b, j: (b, j, 0, 0)),
                      pl.BlockSpec((out_w, W), lambda b, j: (0, 0))],
            out_specs=pl.BlockSpec((1, th, out_w, C), lambda b, j: (b, j, 0, 0)),
            compiler_params=_cp(("parallel", "parallel")),
        )(y, mw)
    return y


def flat_interpolate(x_flat, old, new):
    if tuple(old) == tuple(new):
        return x_flat
    B, N, C = x_flat.shape
    x = x_flat.reshape(B, old[0], old[1], C)
    x = resize_bilinear(x, new[0], new[1], align_corners=False, antialias=True)
    return x.reshape(B, new[0] * new[1], C)


# ----------------------------------------------------------------------------
# Module pieces built on the kernels
# ----------------------------------------------------------------------------
def conv_transpose_block(x, w, b, k, residual=None):
    """ConvTranspose2d(kernel=k, stride=k, padding=0).  w: (Cin, Cout*k*k), (cout,ky,kx) order."""
    # TODO(synk): fold the kxk pixel-shuffle into the GEMM out index_map (strided out_spec) to
    # avoid one HBM relayout of the upsampled activation per level.
    B, H, W, Cin = x.shape
    Cout = w.shape[1] // (k * k)
    if k == 1:
        return fused_linear(x, w, bias=b, residual=residual, out_dtype=jnp.bfloat16)
    y = fused_linear(x, w, bias=jnp.repeat(b, k * k), out_dtype=jnp.bfloat16)
    y = y.reshape(B, H, W, Cout, k, k)
    y = jnp.transpose(y, (0, 1, 4, 2, 5, 3)).reshape(B, H * k, W * k, Cout)
    return y if residual is None else residual.astype(jnp.bfloat16) + y


def cvnxt_block(x, p):
    """ConvNeXt-style ResidualConvUnit used by ResUpsampleBil (use_norm=False)."""
    y = pallas_dwconv7x7(x, p["dw_w"], p["dw_b"], out_dtype=jnp.bfloat16)
    y = fused_linear(y, p["pw1_w"], bias=p["pw1_b"], activation="gelu", out_dtype=jnp.bfloat16)
    return fused_linear(y, p["pw2_w"], bias=p["pw2_b"], scale=p["gamma"], residual=x,
                        out_dtype=jnp.bfloat16)


def res_upsample_bil(x, p):
    for blk in p["blocks"]:
        x = cvnxt_block(x, blk)
    x = fused_linear(x, p["proj_w"], bias=p["proj_b"], out_dtype=jnp.bfloat16)
    B, H, W, C = x.shape
    return resize_bilinear(x, 2 * H, 2 * W, align_corners=True, out_dtype=jnp.bfloat16)


def attention_block(x, ctx, p, num_heads):
    """Cross-attention block (layer_scale<=0 -> no LayerScale, use_bias=False)."""
    x = x.astype(jnp.bfloat16)
    q = fused_linear(x, p["q_w"], ln=(p["nx_g"], p["nx_b"]), out_dtype=jnp.bfloat16)
    kv = fused_linear(ctx, p["kv_w"], ln=(p["nc_g"], p["nc_b"]), out_dtype=jnp.bfloat16)
    o = pallas_mha(q, kv, num_heads)
    x = fused_linear(o, p["out_w"], residual=x, out_dtype=jnp.bfloat16)
    y = fused_linear(x, p["mlp1_w"], bias=p["mlp1_b"],
                     ln=(p["mlp_n_g"], p["mlp_n_b"]), activation="gelu", out_dtype=jnp.bfloat16)
    return fused_linear(y, p["mlp2_w"], bias=p["mlp2_b"], residual=x, out_dtype=jnp.bfloat16)


def embed_rays(rays_hr, shapes, original_shapes, hidden_dim):
    B = rays_hr.shape[0]
    re = flat_interpolate(rays_hr, original_shapes, shapes)        # (B, hw, 3)
    nrm = jnp.sqrt(jnp.sum(re * re, axis=-1, keepdims=True))
    re = re / jnp.maximum(nrm, 1e-4)
    x, y, z = re[..., 0], re[..., 1], re[..., 2]
    polar = jnp.arccos(z)
    sign = 2.0 * (x >= 0).astype(jnp.float32) - 1.0
    x_clipped = jnp.maximum(jnp.abs(x), 1e-3) * sign
    azimuth = jnp.arctan2(y, x_clipped)
    emb = jnp.stack([polar, azimuth], axis=-1)                     # (B, hw, 2)
    # TODO(synk): exact generate_fourier_features frequency schedule reconstructed
    # (log-spaced bands, sin-only, cat_orig=False).
    num_bands = hidden_dim // 2
    max_freq = max(max(shapes) // 2, 1)
    freqs = 2.0 ** jnp.linspace(0.0, math.log2(float(max(max_freq, 2))), num_bands)
    fe = (emb[..., None] * freqs).reshape(B, -1, hidden_dim)
    return jnp.sin(fe)


# ----------------------------------------------------------------------------
# Parameters (deterministic synthetic init; shapes follow the PyTorch __init__)
# ----------------------------------------------------------------------------
class KeyGen:
    def __init__(self, key):
        self.key = key

    def __call__(self):
        self.key, sub = jax.random.split(self.key)
        return sub


def _w(kg, shape, scale=0.05, dtype=jnp.bfloat16):
    return (scale * jax.random.normal(kg(), shape)).astype(dtype)


def init_attn_block(kg, dim, expansion):
    return dict(
        nx_g=jnp.ones((dim,), jnp.float32), nx_b=jnp.zeros((dim,), jnp.float32),
        nc_g=jnp.ones((dim,), jnp.float32), nc_b=jnp.zeros((dim,), jnp.float32),
        q_w=_w(kg, (dim, dim)), kv_w=_w(kg, (dim, 2 * dim)), out_w=_w(kg, (dim, dim)),
        mlp_n_g=jnp.ones((dim,), jnp.float32), mlp_n_b=jnp.zeros((dim,), jnp.float32),
        mlp1_w=_w(kg, (dim, expansion * dim)), mlp1_b=jnp.zeros((expansion * dim,), jnp.float32),
        mlp2_w=_w(kg, (expansion * dim, dim)), mlp2_b=jnp.zeros((dim,), jnp.float32),
    )


def init_params(key, hidden_dim, num_heads, expansion, depths, out_dim=1,
                layer_scale=1.0, num_prompt_blocks=1):
    kg = KeyGen(key)
    P = {}
    P["prompt_camera"] = [
        [init_attn_block(kg, hidden_dim, expansion) for _ in range(num_prompt_blocks)]
        for _ in range(4)
    ]
    P["to_latents"] = dict(w=_w(kg, (hidden_dim, hidden_dim)),
                           b=jnp.zeros((hidden_dim,), jnp.float32))
    mult = 2
    P["process_features"] = []
    P["ups"] = []
    next_dim = output_dim = hidden_dim
    for i, depth in enumerate(depths):
        current_dim = min(hidden_dim, mult * hidden_dim // int(2 ** i))
        next_dim = mult * hidden_dim // int(2 ** (i + 1))
        output_dim = max(next_dim, out_dim)
        k = max(1, 2 * i)
        P["process_features"].append(dict(
            w=_w(kg, (hidden_dim, current_dim * k * k)),
            b=jnp.zeros((current_dim,), jnp.float32),
            k=k))
        blocks = [dict(
            dw_w=_w(kg, (49, current_dim), dtype=jnp.float32),
            dw_b=jnp.zeros((current_dim,), jnp.float32),
            pw1_w=_w(kg, (current_dim, expansion * current_dim)),
            pw1_b=jnp.zeros((expansion * current_dim,), jnp.float32),
            pw2_w=_w(kg, (expansion * current_dim, current_dim)),
            pw2_b=jnp.zeros((current_dim,), jnp.float32),
            gamma=layer_scale * jnp.ones((current_dim,), jnp.float32),
        ) for _ in range(depth)]
        P["ups"].append(dict(blocks=blocks,
                             proj_w=_w(kg, (current_dim, output_dim)),
                             proj_b=jnp.zeros((output_dim,), jnp.float32)))
    P["depth_mlp"] = dict(ln_g=jnp.ones((next_dim,), jnp.float32),
                          ln_b=jnp.zeros((next_dim,), jnp.float32),
                          w=_w(kg, (next_dim, output_dim)),
                          b=jnp.zeros((output_dim,), jnp.float32))
    P["confidence_mlp"] = dict(ln_g=jnp.ones((next_dim,), jnp.float32),
                               ln_b=jnp.zeros((next_dim,), jnp.float32),
                               w=_w(kg, (next_dim, output_dim)),
                               b=jnp.zeros((output_dim,), jnp.float32))
    half = output_dim // 2
    P["to_depth_lr"] = dict(w=_w(kg, (9, output_dim, half)), b=jnp.zeros((half,), jnp.float32))
    P["to_confidence_lr"] = dict(w=_w(kg, (9, output_dim, half)), b=jnp.zeros((half,), jnp.float32))
    P["to_depth_hr"] = [dict(w=_w(kg, (9, half, 32)), b=jnp.zeros((32,), jnp.float32)),
                        dict(w=_w(kg, (32, 1)), b=jnp.zeros((1,), jnp.float32))]
    P["to_confidence_hr"] = [dict(w=_w(kg, (9, half, 32)), b=jnp.zeros((32,), jnp.float32)),
                             dict(w=_w(kg, (32, 1)), b=jnp.zeros((1,), jnp.float32))]
    return P


# ----------------------------------------------------------------------------
# DepthHead forward
# ----------------------------------------------------------------------------
def depth_head_forward(params, features, rays_hr, pos_embed, level_embed, *,
                       shapes, original_shapes, hidden_dim, num_heads, depths):
    del pos_embed, level_embed  # unused by the reference forward
    B = features[0].shape[0]
    h, w = shapes

    # embed_rays
    rays_emb = embed_rays(rays_hr, shapes, original_shapes, hidden_dim)
    rays_ctx = rays_emb.astype(jnp.bfloat16)          # single cast, reused by all prompters

    # condition (prompt_camera cross-attention)
    cond = []
    for layer_blocks, feat in zip(params["prompt_camera"], features):
        x = feat.reshape(B, h * w, hidden_dim)
        for blk in layer_blocks:
            x = attention_block(x, rays_ctx, blk, num_heads)
        cond.append(x)

    # process
    init_lat = fused_linear(cond[0], params["to_latents"]["w"], bias=params["to_latents"]["b"])
    lat = init_lat.reshape(B, h, w, hidden_dim)
    proj_latents_16 = jnp.transpose(lat, (0, 3, 1, 2))            # NCHW, f32
    cond_maps = [c.reshape(B, h, w, hidden_dim) for c in cond]

    out_features = []
    x = lat
    for i in range(len(depths)):
        pf = params["process_features"][i]
        x = conv_transpose_block(cond_maps[i + 1], pf["w"], pf["b"], pf["k"], residual=x)
        x = res_upsample_bil(x, params["ups"][i])
        out_features.append(x)

    # depth_proj
    psd_feat = []
    logdepth = None
    for i, f in enumerate(out_features):
        if i == len(out_features) - 1:
            dm = params["depth_mlp"]
            g = fused_linear(f, dm["w"], bias=dm["b"], ln=(dm["ln_g"], dm["ln_b"]),
                             out_dtype=jnp.bfloat16)
            # F.interpolate to (h_out, w_out) is the identity here (already that size).
            logdepth = g
        else:
            g = f
        psd_feat.append(jnp.transpose(g, (0, 3, 1, 2)).astype(jnp.float32))
    logdepth = conv3x3_reflect(logdepth, params["to_depth_lr"]["w"], params["to_depth_lr"]["b"])
    logdepth = resize_bilinear(logdepth, original_shapes[0], original_shapes[1], align_corners=True)
    logdepth = conv3x3_reflect(logdepth, params["to_depth_hr"][0]["w"],
                               params["to_depth_hr"][0]["b"], activation="leaky_relu",
                               post=(params["to_depth_hr"][1]["w"], params["to_depth_hr"][1]["b"]))
    logdepth = jnp.transpose(logdepth, (0, 3, 1, 2))

    # confidence_proj
    cm = params["confidence_mlp"]
    conf = fused_linear(out_features[-1], cm["w"], bias=cm["b"], ln=(cm["ln_g"], cm["ln_b"]),
                        out_dtype=jnp.bfloat16)
    conf = conv3x3_reflect(conf, params["to_confidence_lr"]["w"], params["to_confidence_lr"]["b"])
    conf = resize_bilinear(conf, original_shapes[0], original_shapes[1], align_corners=True)
    conf = conv3x3_reflect(conf, params["to_confidence_hr"][0]["w"],
                           params["to_confidence_hr"][0]["b"], activation="leaky_relu",
                           post=(params["to_confidence_hr"][1]["w"],
                                 params["to_confidence_hr"][1]["b"]))
    conf = jnp.transpose(conf, (0, 3, 1, 2))

    return logdepth, conf, proj_latents_16, psd_feat


# ----------------------------------------------------------------------------
if __name__ == "__main__":
    B = 2
    hidden_dim = 32
    num_heads = 8
    expansion = 4
    depths = [1, 1, 1]          # list of 3 so that conditioned_features[i+1] indexing is valid
    shapes = (4, 4)             # latent grid
    original_shapes = (16, 16)  # "image" resolution

    params = init_params(jax.random.PRNGKey(1), hidden_dim, num_heads, expansion, depths)

    key = jax.random.PRNGKey(0)
    kf, kr = jax.random.split(key)
    features = [jax.random.normal(jax.random.fold_in(kf, i),
                                  (B, shapes[0], shapes[1], hidden_dim), jnp.float32)
                for i in range(4)]
    rays_hr = jax.random.normal(kr, (B, original_shapes[0] * original_shapes[1], 3), jnp.float32)

    logdepth, logconf, proj16, psd_feat = depth_head_forward(
        params, features, rays_hr, None, None,
        shapes=shapes, original_shapes=original_shapes,
        hidden_dim=hidden_dim, num_heads=num_heads, depths=depths)

    jax.block_until_ready((logdepth, logconf, proj16, psd_feat))
    assert logdepth.shape == (B, 1, original_shapes[0], original_shapes[1])
    assert logconf.shape == (B, 1, original_shapes[0], original_shapes[1])
    assert proj16.shape == (B, hidden_dim, shapes[0], shapes[1])
    assert len(psd_feat) == len(depths)
    print("KERNEL_OK")
</pallas_src>

<mosaic_0001>
module attributes {stable_mosaic.version = 11 : i64} {
  func.func @_resize_h_kernel(%arg0: i32, %arg1: i32, %arg2: memref<1x16x48xf32, #tpu.memory_space<vmem>>, %arg3: memref<4x16xf32, #tpu.memory_space<vmem>>, %arg4: memref<1x4x48xf32, #tpu.memory_space<vmem>>) attributes {dimension_semantics = [#tpu.dimension_semantics<parallel>, #tpu.dimension_semantics<parallel>], iteration_bounds = array<i64: 2, 1>, scalar_prefetch = 0 : i64, scratch_operands = 0 : i64, tpu.core_type = #tpu.core_type<tc>, window_params = [{transform_indices = @transform_0, window_bounds = array<i64: 1, 16, 48>}, {pipeline_mode = #tpu.pipeline_mode<synchronous>, transform_indices = @transform_1, window_bounds = array<i64: 4, 16>}, {transform_indices = @transform_2, window_bounds = array<i64: 1, 4, 48>}]} {
    %c0 = arith.constant 0 : index
    %c0_0 = arith.constant 0 : index
    %0 = vector.load %arg3[%c0, %c0_0] : memref<4x16xf32, #tpu.memory_space<vmem>>, vector<4x16xf32>
    %c0_1 = arith.constant 0 : index
    %c0_2 = arith.constant 0 : index
    %c0_3 = arith.constant 0 : index
    %1 = vector.load %arg2[%c0_1, %c0_2, %c0_3] : memref<1x16x48xf32, #tpu.memory_space<vmem>>, vector<1x16x48xf32>
    %2 = vector.shape_cast %1 : vector<1x16x48xf32> to vector<16x48xf32>
    %cst = arith.constant dense<0.000000e+00> : vector<4x48xf32>
    %3 = tpu.matmul %0, %2, %cst {dimension_numbers = #tpu.dot_dimension_numbers<[1], [0], [0], [1], [0, 0, 1, 1], [], []>} : vector<4x16xf32>, vector<16x48xf32>, vector<4x48xf32> -> vector<4x48xf32>
    %c0_4 = arith.constant 0 : index
    %c0_5 = arith.constant 0 : index
    %c0_6 = arith.constant 0 : index
    %4 = vector.load %arg4[%c0_4, %c0_5, %c0_6] : memref<1x4x48xf32, #tpu.memory_space<vmem>>, vector<1x4x48xf32>
    %5 = vector.shape_cast %4 : vector<1x4x48xf32> to vector<4x48xf32>
    %6 = vector.shape_cast %3 : vector<4x48xf32> to vector<1x4x48xf32>
    tpu.vector_store %arg4[%c0_4, %c0_5, %c0_6], %6 {strides = array<i32>} : memref<1x4x48xf32, #tpu.memory_space<vmem>>, vector<1x4x48xf32>,
    return
  }
  func.func @transform_0(%arg0: i32, %arg1: i32) -> (i32, i32, i32) {
    %c0_i32 = arith.constant 0 : i32
    %c0_i32_0 = arith.constant 0 : i32
    return %arg0, %c0_i32, %arg1 : i32, i32, i32
  }
  func.func @transform_1(%arg0: i32, %arg1: i32) -> (i32, i32) {
    %c0_i32 = arith.constant 0 : i32
    %c0_i32_0 = arith.constant 0 : i32
    %c0_i32_1 = arith.constant 0 : i32
    return %c0_i32, %c0_i32_0 : i32, i32
  }
  func.func @transform_2(%arg0: i32, %arg1: i32) -> (i32, i32, i32) {
    %c0_i32 = arith.constant 0 : i32
    %c0_i32_0 = arith.constant 0 : i32
    return %arg0, %c0_i32, %arg1 : i32, i32, i32
  }
}

</mosaic_0001>

<bundles_post_ra>
// kernel: tpu_custom_call.1
= control target key start
LH: loop header
LB: loop body
LE: loop exit
PB: predicated region body
PF: predicated region fallthrough
CT: control target
= control target key end

     0   :  { %7 = vsyncpa [#allocation3], 0  ;;  %s875_s0 = inlined_call_operand.hbm [shape: f32[2,16,48], index: 0, kind: input, shape index: {}]   ;;  %s876_s1 = inlined_call_operand.hbm [shape: f32[4,16], index: 1, kind: input, shape index: {}]   ;;  %s877_s2 = inlined_call_operand.hbm [shape: f32[2,4,48], index: 2, kind: output, shape index: {}]  }
   0x1   :  { %9 = vsyncpa [#allocation3 + $0x1], 0 }
   0x2   :  { %10 = vsyncpa [#allocation6], 0 }
   0x3   :  { %11 = vsyncpa [#allocation4], 0 }
   0x4   :  { %13 = vsyncpa [#allocation4 + $0x1], 0  ;;  %s655_s9 = smov 0   ;;  %s657_s10 = smov 0  }
   0x5   :  { %s659_s11 = smov 0   ;;  %s661_s12 = smov 0  }
   0x6   :  { %s663_s13 = smov 0   ;;  %s665_s14 = smov 0  }
   0x7 LB: > { %s377_s15 = sadd.s32 4294967295, %s630_s14   ;;  %s378_s16 = sadd.s32 4294967294, %s630_s14   ;;  %s630_s14 = sphi %s665_s14, %s19_s14   ;;  %s626_s13 = sphi %s663_s13, %s905_s13   ;;  %s622_s12 = sphi %s661_s12, %s904_s12   ;;  %s618_s11 = sphi %s659_s11, %s903_s11   ;;  %s614_s10 = sphi %s657_s10, %s902_s10   ;;  %s610_s9 = sphi %s655_s9, %s901_s9  }
   0x8   : > { %s40_s17 = sadd.s32 1, %s618_s11  ;;  %p47_p0 = scmp.ne.s32.totalorder %s618_s11, %s614_s10 }
   0x9   : > { %p48_p1 = scmp.eq.s32.totalorder %s630_s14, 0  ;;  %p53_p2 = scmp.ne.s32.totalorder %s614_s10, %s610_s9 }
   0xa   : > { %p693_p3 = scmp.eq.s32.totalorder %s377_s15, 0  ;;  %p100_p4 = scmp.eq.s32.totalorder %s377_s15, 1 }
   0xb   : > { %p697_p5 = por %p48_p1, %p47_p0  ;;  %p106_p6 = scmp.eq.s32.totalorder %s378_s16, 1 }
   0xc   : > { %s884_s18 = scalar_select %p693_p3, 1, 0 }
   0xd   : > { %p703_p7 = por %p693_p3, %p53_p2  ;;  %p707_p8 = por %p100_p4, %p47_p0 }
   0xe   : > { %p711_p9 = por %p106_p6, %p53_p2  ;;  %p379_p10 = scmp.ge.s32.totalorder %s630_s14, 1 }
   0xf   : > { %s886_s20 = scalar_select %p703_p7, 1, 0 }
  0x10   : > { %s887_s21 = scalar_select %p707_p8, 1, 0 }
  0x11   : > { %s888_s22 = scalar_select %p711_p9, 1, 0 }
  0x12   : > { %p113_p11 = scmp.lt.s32.totalorder %s630_s14, 3  ;;  %s632_s24 = smov [#allocation5]  }
  0x13   : > { %s126_s25 = sshll.u32 %s632_s24, 4  ;;  %p429_p1 = scmp.lt.s32.totalorder %s630_s14, 2  ;;  %s127_s25 = int_to_ptr.vmem [resolvable:$true] %s126_s25 }
  0x14   : > { %p718_p13 = pnand %p379_p10, %p113_p11  ;;  %s31_s28 = sadd.s32 1, %s626_s13 }
  0x15   : > { %p727_p4 = pnand %p429_p1, %p697_p5  ;;  %p738_p6 = scmp.ge.s32.totalorder %s31_s28, 2 }
  0x16   : > { %s889_s23 = scalar_select %p718_p13, 1, 0 }
  0x17   : > { %p416_p0 = pneg %p718_p13  ;;  %s137_s30 = sand.u32 1, %s618_s11  }
  0x18   : > { %s890_s26 = scalar_select %p727_p4, 1, 0 }
  0x19   : > { %p733_p2 = pnand %p416_p0, %p693_p3  ;;  %s486_s5 = scalar_lea.hbm %s876_s1, 64 }
  0x1a   : > { %s892_s29 = scalar_select %p738_p6, 1, 0 }
  0x1b   : > { %p487_p5 = scmp.ne.s32.totalorder %s876_s1, %s486_s5  ;;  %p488_p10 = pneg %p733_p2 }
  0x1c   : > { %p493_p0 = scmp.lt.u32.totalorder %s486_s5, %s876_s1 }
  0x1d   : > { %p489_p11 = pnand %p488_p10, %p487_p5 }
  0x1f   : > { %p490_p1 = pneg %p489_p11 }
  0x21   : > { %p495_p12 = pnand %p493_p0, %p490_p1 }
  0x23   : > { %498 = shalt.err (!%p495_p12)
}
  0x24   : > { %s499_s16 = scalar_lea.vmem %s127_s25, 64  ;;  %p507_p7 = scmp.lt.s32.totalorder %s127_s25, %s127_s25 }
  0x25   : > { %p500_p9 = scmp.ne.s32.totalorder %s127_s25, %s499_s16  ;;  %p508_p13 = scmp.lt.s32.totalorder %s499_s16, %s499_s16 }
  0x27   : > { %p502_p8 = pnand %p500_p9, %p488_p10  ;;  %p509_p4 = por %p508_p13, %p507_p7 }
  0x29   : > { %p503_p3 = pneg %p502_p8 }
  0x2b   : > { %p510_p6 = pnand %p509_p4, %p503_p3 }
  0x2d   : > { %513 = shalt.err (!%p510_p6)
}
  0x2e   : > { %419 = dma.hbm_to_vmem [thread:$0]  (!%p733_p2), %s876_s1, 64, %s127_s25, [#allocation6]  }
  0x2f   : > { %p893_p9 = scmp.ne.s32.totalorder %s892_s29, 0  ;;  %s382_s3 = sshll.u32 %s137_s30, 4 }
  0x30   : > { %s394_s5 = sshll.u32 %s626_s13, 8  ;;  %s141_s8 = scalar_lea.vmem [#allocation2], %s382_s3 }
  0x31   : > { %s907_s28 = smov (%p893_p9, %s31_s28), 0  ;;  %s769_s7 = scalar_lea.hbm %s875_s0, %s394_s5 }
  0x32   : > { %s35_s4 = ssub.s32 %s626_s13, %s907_s28  ;;  %s149_s15 = sshll.u32 %s141_s8, 4  ;;  %s776_s15 = int_to_ptr.vmem [resolvable:$true] %s149_s15 }
  0x33   : > { %p38_p3 = scmp.eq.s32.totalorder %s35_s4, 0  ;;  %s778_s29 = scalar_lea.sflag [#allocation3], %s137_s30 }
  0x34   : > { %s514_s16 = scalar_lea.hbm %s769_s7, 256  ;;  %p894_p8 = scmp.ne.s32.totalorder %s890_s26, 0 }
  0x35   : > { %s774_s25 = scalar_select %p38_p3, %s618_s11, %s40_s17  }
  0x36   : > { %p515_p7 = scmp.ne.s32.totalorder %s769_s7, %s514_s16  ;;  %p516_p12 = pneg %p894_p8 }
  0x37   : > { %s519_s3 = scalar_lea.hbm %s875_s0, 512  ;;  %p520_p2 = scmp.lt.u32.totalorder %s769_s7, %s875_s0 }
  0x38   : > { %p517_p13 = pnand %p516_p12, %p515_p7  ;;  %p521_p6 = scmp.lt.u32.totalorder %s519_s3, %s514_s16 }
  0x39   : > { %p523_p10 = scmp.lt.u32.totalorder %s514_s16, %s769_s7 }
  0x3a   : > { %p518_p4 = pneg %p517_p13  ;;  %p522_p5 = por %p521_p6, %p520_p2 }
  0x3c   : > { %p524_p11 = por %p523_p10, %p522_p5 }
  0x3e   : > { %p525_p1 = pnand %p524_p11, %p518_p4 }
  0x40   : > { %528 = shalt.err (!%p525_p1)
}
  0x41   : > { %s529_s17 = scalar_lea.vmem %s776_s15, 256  ;;  %s633_s30 = smov [#allocation2]  }
  0x42   : > { %p530_p0 = scmp.ne.s32.totalorder %s776_s15, %s529_s17  ;;  %s534_s27 = sshll.u32 %s633_s30, 4  ;;  %s535_s27 = int_to_ptr.vmem [resolvable:$false] %s534_s27 }
  0x43   : > { %s536_s6 = scalar_lea.vmem %s535_s27, 512  ;;  %p537_p7 = scmp.lt.s32.totalorder %s776_s15, %s535_s27 }
  0x44   : > { %p532_p9 = pnand %p530_p0, %p516_p12  ;;  %p538_p13 = scmp.lt.s32.totalorder %s536_s6, %s529_s17 }
  0x46   : > { %p533_p3 = pneg %p532_p9  ;;  %p539_p2 = por %p538_p13, %p537_p7 }
  0x48   : > { %p540_p6 = pnand %p539_p2, %p533_p3 }
  0x4a   : > { %543 = shalt.err (!%p540_p6)
}
  0x4b   : > { %s634_s8 = smov 128   ;;  %s635_s16 = smov 8  }
  0x4c   : > { %423 = dma.hbm_to_vmem [thread:$0]  (!%p894_p8), %s769_s7, 256, %s776_s15, %s778_s29, %s634_s8, %s634_s8, %s635_s16  }
  0x4d   : > { %p895_p12 = scmp.ne.s32.totalorder %s889_s23, 0 }
  0x4e   : > { %s809_s19 = sand.u32 (!%p895_p12), 1, %s614_s10   ;;  %p896_p4 = scmp.ne.s32.totalorder (!%p895_p12), %s886_s20, 0 }
  0x4f   : > { %161 = sbr.rel (%p895_p12) target bundleno = 323 (0x143), region = 28  ;;  %s386_s24 = sshll.u32 (!%p895_p12), %s809_s19, 4 }
  0x50   : > { %s164_s3 = scalar_lea.sflag (!%p895_p12), [#allocation3], %s809_s19  ;;  %s167_s4 = scalar_lea.vmem (!%p895_p12), [#allocation2], %s386_s24 }
  0x56   : > { %597 = dma.done.wait (%p896_p4), %s164_s3, 256  }
  0x57   : > { %599 = vsyncadd (%p896_p4), %s164_s3, 4294967040  ;;  %p897_p5 = scmp.ne.s32.totalorder %s884_s18, 0 }
  0x59   : > { %601 = dma.done.wait (%p897_p5), [#allocation6], 64  }
  0x5a   : > { %603 = vsyncadd (%p897_p5), [#allocation6], 4294967232  ;;  %v636_v0 = vmov 0.0|0.0   ;;  %vm637_vm0 = vmmov 0   ;;  %v638_v1 = vmov 0.0   ;;  %v193_v2 = vld [vmem:[%s167_s4] sm:$0xff] }
  0x5b   : > { %405 = vmatprep.subr.bf16.mxu0 %v636_v0  ;;  %402 = vmatprep.mubr.msk.f32.mxu0 %vm637_vm0, %v638_v1  ;;  %v194_v3 = vld [vmem:[%s167_s4 + $0x8] sm:$0xff]  ;;  %v192_v5 = vld [vmem:[#allocation5] sm:$0xf]  ;;  %vm195_vm1 = vcmask 130048   ;;  %s388_s20 = sshll.u32 %s809_s19, 2  ;;  %s391_s23 = sshll.u32 %s622_s12, 6 }
  0x5c   : > { %v406_v4 = vpack.c.bf16 %v194_v3, %v193_v2  ;;  %s191_s18 = scalar_lea.vmem [#allocation7], %s388_s20  ;;  %vm269_vm2 = vcmask 388096   ;;  %s826_s29 = scalar_lea.hbm %s877_s2, %s391_s23 }
  0x5d   : > { %s286_s26 = sshll.u32 %s191_s18, 4  ;;  %s272_s5 = scalar_lea.sflag [#allocation4], %s809_s19  ;;  %s828_s26 = int_to_ptr.vmem [resolvable:$true] %s286_s26 }
  0x5e   : > { %407 = vmatpush3.bf16.msra.mxu0 %v406_v4  ;;  %s544_s17 = scalar_lea.vmem %s828_s26, 64  ;;  %p898_p10 = scmp.ne.s32.totalorder %s887_s21, 0 }
  0x5f   : > { %p545_p8 = scmp.ne.s32.totalorder %s828_s26, %s544_s17  ;;  %s639_s12 = smov [#allocation7]  }
  0x60   : > { %s548_s30 = sshll.u32 %s639_s12, 4  ;;  %s549_s30 = int_to_ptr.vmem [resolvable:$false] %s548_s30 }
  0x61   : > { %403 = vmatmul.mubr.msk.f32.vlgmr.msra.gmra.mrb[0].mxu0 %vm195_vm1, %v192_v5  ;;  %p546_p11 = pnand %p545_p8, %p898_p10  ;;  %s550_s27 = scalar_lea.vmem %s549_s30, 128 }
  0x62   : > { %p551_p0 = scmp.lt.s32.totalorder %s828_s26, %s549_s30  ;;  %p552_p9 = scmp.lt.s32.totalorder %s550_s27, %s544_s17 }
  0x63   : > { %p547_p1 = pneg %p546_p11 }
  0x64   : > { %p553_p3 = por %p552_p9, %p551_p0 }
  0x66   : > { %p554_p7 = pnand %p553_p3, %p547_p1 }
 0x134   : > { %v265_v6 = vpop.f32.mrb[0].mxu0 }
 0x135   : > { %270 = vst.msk [vmem:[%s191_s18] sm:$0xf] %vm269_vm2, %v265_v6  ;;  %v404_v7 = vpop.f32.mrb[1].mxu0 }
 0x136   : > { %557 = shalt.err (!%p554_p7)
}
 0x137   : > { %s558_s6 = scalar_lea.hbm %s826_s29, 64  ;;  %s562_s19 = scalar_lea.hbm %s877_s2, 128 }
 0x138   : > { %p559_p13 = scmp.ne.s32.totalorder %s826_s29, %s558_s6  ;;  %p563_p12 = scmp.lt.u32.totalorder %s826_s29, %s877_s2 }
 0x139   : > { %p564_p4 = scmp.lt.u32.totalorder %s562_s19, %s558_s6  ;;  %p566_p8 = scmp.lt.u32.totalorder %s558_s6, %s826_s29 }
 0x13a   : > { %p560_p2 = pnand %p559_p13, %p898_p10 }
 0x13b   : > { %p565_p5 = por %p564_p4, %p563_p12 }
 0x13c   : > { %p561_p6 = pneg %p560_p2 }
 0x13d   : > { %p567_p11 = por %p566_p8, %p565_p5 }
 0x13f   : > { %p568_p1 = pnand %p567_p11, %p561_p6 }
 0x141   : > { %571 = shalt.err (!%p568_p1)
}
 0x142   : > { %414 = dma.vmem_to_hbm [thread:$0]  (%p898_p10), %s828_s26, 64, %s826_s29, %s272_s5  }
 0x143 PF: > { %s298_s4 = sand.u32 1, %s610_s9   ;;  %p899_p0 = scmp.ne.s32.totalorder %s888_s22, 0 }
 0x144   : > { %p900_p9 = scmp.ge.s32.totalorder %s630_s14, 2  ;;  %s299_s20 = scalar_lea.sflag [#allocation4], %s298_s4 }
 0x146   : > { %p425_p3 = pnand %p900_p9, %p899_p0 }
 0x148   : > { %605 = dma.done.wait (!%p425_p3), %s299_s20, 64  }
 0x149   : > { %607 = vsyncadd (!%p425_p3), %s299_s20, 4294967232  ;;  %s19_s14 = sadd.s32 1, %s630_s14   ;;  %s901_s9 = smov %s614_s10 }
 0x14a   : > { %p16_p7 = scmp.ge.s32.totalorder %s19_s14, 4   ;;  %s902_s10 = smov %s618_s11 }
 0x14b   : > { %s903_s11 = smov %s774_s25  ;;  %s904_s12 = smov %s626_s13 }
 0x14c   : > { %s905_s13 = smov %s907_s28  ;;  %18 = sbr.rel (!%p16_p7) target bundleno = 7 (0x7), region = 77 }
 0x153   :  { %304 = vsyncpa [#allocation3], 1 }
 0x154   :  { %306 = vsyncpa [#allocation3 + $0x1], 1 }
 0x155   :  { %307 = vsyncpa [#allocation6], 1 }
 0x156   :  { %308 = vsyncpa [#allocation4], 1 }
 0x157   :  { %310 = vsyncpa [#allocation4 + $0x1], 1 }

</bundles_post_ra>
